<compile_context>
chip_gen: v7x
topology: tpu7x:2x2x1
jax: 0.10.0
libtpu: 0.0.40
codegen_flags: <defaults>
</compile_context>

<pallas_src>
import functools
import math

import jax
import jax.numpy as jnp
from jax.experimental import pallas as pl
from jax.experimental.pallas import tpu as pltpu

_VMEM_BUDGET = 40 * 1024 * 1024          # plan tile sizes against this
_VMEM_LIMIT = 48 * 1024 * 1024           # scoped limit; leaves headroom on v7x


# -----------------------------------------------------------------------------
# One-time per-layer weight preparation (hoisted out of the per-call forward).
# -----------------------------------------------------------------------------
def prepare_expand_weight(weight, scale, compute_dtype=None):
    """weight: (dim_interm, dim) from nn.Linear(dim, dim_interm, bias=False).

    Returns wt: (dim, dim_interm), transposed and column-permuted so the matmul
    output channel order is (i, j, c) instead of PyTorch's PixelShuffle order
    (c, i, j)  [original channel index = c*r*r + i*r + j].
    Optionally cast to the compute dtype here (once) instead of per call.
    """
    dim_interm, _ = weight.shape
    r = scale
    c_out = dim_interm // (r * r)
    idx = jnp.arange(dim_interm).reshape(c_out, r, r)     # idx[c, i, j]
    perm = jnp.transpose(idx, (1, 2, 0)).reshape(-1)      # new order (i, j, c)
    wt = jnp.transpose(weight, (1, 0))[:, perm]           # (dim, dim_interm)
    if compute_dtype is not None:
        wt = wt.astype(compute_dtype)
    return wt


# -----------------------------------------------------------------------------
# Kernels
# -----------------------------------------------------------------------------
def _fused_expand_shuffle_kernel(x_ref, w_ref, o_ref, *, rows, W, r, rc):
    """One grid step: (rows*W, K) @ (K, r*rc) -> scatter into (rows, r, W, rc).

    Weight columns are ordered (i, j, c), so the i-th contiguous rc-wide slab
    of the matmul result is exactly output row-offset i: the pixel shuffle is
    realised with r static slab stores (no transpose anywhere).
    """
    y = jnp.dot(x_ref[...].astype(w_ref.dtype), w_ref[...],
                preferred_element_type=jnp.float32)        # (rows*W, r*rc) f32
    for i in range(r):                                     # r is small & static
        yi = y[:, i * rc:(i + 1) * rc]                     # channels (i, :, :)
        o_ref[:, i, :, :] = yi.reshape(rows, W, rc).astype(o_ref.dtype)


def _matmul_kernel(x_ref, w_ref, o_ref):
    """Fallback: plain token-tile matmul with the whole weight resident."""
    o_ref[...] = jnp.dot(x_ref[...].astype(w_ref.dtype), w_ref[...],
                         preferred_element_type=jnp.float32).astype(o_ref.dtype)


# -----------------------------------------------------------------------------
# Forward
# -----------------------------------------------------------------------------
def patch_expand_forward(x, wt, *, dim, dim_out, scale, tm=512):
    """Replicates PatchExpand.forward.

    x:  (B, L, dim), L = H*W with H == W.
    wt: (dim, dim_interm) = prepare_expand_weight(linear_weight, scale[, dtype]).
    Returns (B, L*scale**2, dim_interm // scale**2) in x.dtype.
    """
    assert dim // dim_out == scale or dim == dim_out, "dimension mismatch"
    B, L, K = x.shape
    assert K == dim and wt.shape[0] == dim
    H = W = math.isqrt(L)
    assert H * W == L, "PatchExpand assumes a square token grid"

    N = wt.shape[1]                       # dim_interm
    r = scale
    c_out = N // (r * r)
    rc = r * c_out
    BH = B * H
    M = B * L
    out_dtype = x.dtype

    xb = jnp.dtype(x.dtype).itemsize
    wb = jnp.dtype(wt.dtype).itemsize
    ob = jnp.dtype(out_dtype).itemsize
    cparams = pltpu.CompilerParams(dimension_semantics=("parallel",),
                                   vmem_limit_bytes=_VMEM_LIMIT)
    x_flat = x.reshape(M, K)

    if W % 8 == 0:
        # -------- fused path: Linear + PixelShuffle in one kernel -----------
        rows = min(max(1, tm // W), BH)          # token rows per block
        if BH > 1 and rows >= BH:
            rows = (BH + 1) // 2                 # >= 2 parallel steps (v7x 2 TCs)

        def footprint(rw):                       # double-buffered blocks + weight
            blk = rw * W
            return 2 * blk * K * xb + 2 * K * N * wb + 2 * blk * N * ob

        while rows > 1 and footprint(rows) > _VMEM_BUDGET:
            rows = max(1, rows // 2)

        out4 = pl.pallas_call(
            functools.partial(_fused_expand_shuffle_kernel,
                              rows=rows, W=W, r=r, rc=rc),
            out_shape=jax.ShapeDtypeStruct((BH, r, W, rc), out_dtype),
            grid=(pl.cdiv(BH, rows),),
            in_specs=[
                pl.BlockSpec((rows * W, K), lambda m: (m, 0)),   # token tile
                pl.BlockSpec((K, N), lambda m: (0, 0)),          # resident weight
            ],
            out_specs=pl.BlockSpec((rows, r, W, rc), lambda m: (m, 0, 0, 0)),
            compiler_params=cparams,
        )(x_flat, wt)
        # (b*H + h, i, w, j*c_out + c) flattened row-major is exactly the
        # PatchExpand token order (h*r+i)*W*r + w*r + j -> free contiguous
        # reshape, no transpose pass.
        return out4.reshape(B, H * r * W * r, c_out)

    # -------- fallback (W not sublane-aligned): matmul + XLA shuffle glue ----
    # TODO(synk): extend the fused writeback to W % 8 != 0 token grids (needs an
    # in-VMEM sublane repack of the (rows*W, rc) slabs).
    tmr = min(tm, M)
    if M >= 8:
        tmr = max(8, (tmr // 8) * 8)

    def footprint2(t):
        return 2 * t * K * xb + 2 * K * N * wb + 2 * t * N * ob

    while tmr > 8 and footprint2(tmr) > _VMEM_BUDGET:
        tmr = max(8, (tmr // 2 // 8) * 8)

    y = pl.pallas_call(
        _matmul_kernel,
        out_shape=jax.ShapeDtypeStruct((M, N), out_dtype),
        grid=(pl.cdiv(M, tmr),),
        in_specs=[
            pl.BlockSpec((tmr, K), lambda m: (m, 0)),
            pl.BlockSpec((K, N), lambda m: (0, 0)),
        ],
        out_specs=pl.BlockSpec((tmr, N), lambda m: (m, 0)),
        compiler_params=cparams,
    )(x_flat, wt)
    y = y.reshape(B, H, W, r, rc)
    y = jnp.transpose(y, (0, 1, 3, 2, 4))        # (B, H, i, W, j*c_out)
    return y.reshape(B, H * r * W * r, c_out)


# -----------------------------------------------------------------------------
# Pure-JAX reference mirroring the PyTorch forward (original weight layout).
# -----------------------------------------------------------------------------
def _reference(x, weight, *, scale):
    B, L, dim = x.shape
    H = W = math.isqrt(L)
    y = jnp.einsum("blk,nk->bln", x, weight)               # Linear, no bias
    C = y.shape[-1]
    y = jnp.transpose(y, (0, 2, 1)).reshape(B, C, H, W)    # NCHW
    r = scale
    c_out = C // (r * r)
    y = y.reshape(B, c_out, r, r, H, W)
    y = jnp.transpose(y, (0, 1, 4, 2, 5, 3))               # pixel shuffle
    y = y.reshape(B, c_out, H * r * W * r)
    return jnp.transpose(y, (0, 2, 1))


if __name__ == "__main__":
    key = jax.random.PRNGKey(0)

    # ---- main test: fused path (W % 8 == 0), dim == dim_out branch ----------
    B, Hs = 2, 8
    dim, dim_out, scale = 32, 32, 2
    dim_interm = dim * scale ** 2 if dim == dim_out else dim * scale
    L = Hs * Hs

    kx, kw, kx2 = jax.random.split(key, 3)
    x = jax.random.normal(kx, (B, L, dim), dtype=jnp.float32)
    weight = (jax.random.normal(kw, (dim_interm, dim), dtype=jnp.float32)
              * (1.0 / dim ** 0.5))

    ref = _reference(x, weight, scale=scale)

    fwd = jax.jit(functools.partial(patch_expand_forward,
                                    dim=dim, dim_out=dim_out, scale=scale))

    # f32 path.
    wt_f32 = prepare_expand_weight(weight, scale)
    out = jax.block_until_ready(fwd(x, wt_f32))
    assert out.shape == (B, L * scale ** 2, dim_interm // scale ** 2), out.shape
    assert jnp.allclose(out, ref, atol=1e-4, rtol=1e-4), "f32 mismatch vs reference"

    # bf16 compute path: bf16 weight (prep-time cast), x cast in-kernel,
    # f32 MXU accumulation, output written in x.dtype from the kernel.
    wt_bf16 = prepare_expand_weight(weight, scale, compute_dtype=jnp.bfloat16)
    out_bf16 = jax.block_until_ready(fwd(x, wt_bf16))
    assert out_bf16.shape == out.shape
    assert jnp.allclose(out_bf16, ref, atol=5e-2, rtol=5e-2), "bf16 mismatch"

    # ---- fallback path sanity check (W % 8 != 0 token grid) -----------------
    H2 = 4
    L2 = H2 * H2
    x2 = jax.random.normal(kx2, (B, L2, dim), dtype=jnp.float32)
    ref2 = _reference(x2, weight, scale=scale)
    out2 = jax.block_until_ready(fwd(x2, wt_f32))
    assert out2.shape == ref2.shape
    assert jnp.allclose(out2, ref2, atol=1e-4, rtol=1e-4), "fallback mismatch"

    print("KERNEL_OK")
</pallas_src>

<mosaic_0001>
module attributes {stable_mosaic.version = 11 : i64} {
  func.func @_fused_expand_shuffle_kernel(%arg0: i32, %arg1: memref<64x32xf32, #tpu.memory_space<vmem>>, %arg2: memref<32x128xf32, #tpu.memory_space<vmem>>, %arg3: memref<8x2x8x64xf32, #tpu.memory_space<vmem>>) attributes {dimension_semantics = [#tpu.dimension_semantics<parallel>], iteration_bounds = array<i64: 2>, scalar_prefetch = 0 : i64, scratch_operands = 0 : i64, tpu.core_type = #tpu.core_type<tc>, window_params = [{transform_indices = @transform_0, window_bounds = array<i64: 64, 32>}, {pipeline_mode = #tpu.pipeline_mode<synchronous>, transform_indices = @transform_1, window_bounds = array<i64: 32, 128>}, {transform_indices = @transform_2, window_bounds = array<i64: 8, 2, 8, 64>}]} {
    %c0 = arith.constant 0 : index
    %c0_0 = arith.constant 0 : index
    %0 = vector.load %arg1[%c0, %c0_0] : memref<64x32xf32, #tpu.memory_space<vmem>>, vector<64x32xf32>
    %c0_1 = arith.constant 0 : index
    %c0_2 = arith.constant 0 : index
    %1 = vector.load %arg2[%c0_1, %c0_2] : memref<32x128xf32, #tpu.memory_space<vmem>>, vector<32x128xf32>
    %cst = arith.constant dense<0.000000e+00> : vector<64x128xf32>
    %2 = tpu.matmul %0, %1, %cst {dimension_numbers = #tpu.dot_dimension_numbers<[1], [0], [0], [1], [0, 0, 1, 1], [], []>} : vector<64x32xf32>, vector<32x128xf32>, vector<64x128xf32> -> vector<64x128xf32>
    %3 = vector.extract_strided_slice %2 {offsets = [0, 0], sizes = [64, 64], strides = [1, 1]} : vector<64x128xf32> to vector<64x64xf32>
    %4 = vector.shape_cast %3 : vector<64x64xf32> to vector<8x8x64xf32>
    %c0_3 = arith.constant 0 : index
    %c0_4 = arith.constant 0 : index
    %c0_5 = arith.constant 0 : index
    %c0_6 = arith.constant 0 : index
    %5 = vector.load %arg3[%c0_3, %c0_4, %c0_5, %c0_6] : memref<8x2x8x64xf32, #tpu.memory_space<vmem>>, vector<8x1x8x64xf32>
    %6 = vector.shape_cast %5 : vector<8x1x8x64xf32> to vector<8x8x64xf32>
    %7 = vector.shape_cast %4 : vector<8x8x64xf32> to vector<8x1x8x64xf32>
    tpu.vector_store %arg3[%c0_3, %c0_4, %c0_5, %c0_6], %7 {strides = array<i32>} : memref<8x2x8x64xf32, #tpu.memory_space<vmem>>, vector<8x1x8x64xf32>,
    %8 = vector.extract_strided_slice %2 {offsets = [0, 64], sizes = [64, 64], strides = [1, 1]} : vector<64x128xf32> to vector<64x64xf32>
    %9 = vector.shape_cast %8 : vector<64x64xf32> to vector<8x8x64xf32>
    %c0_7 = arith.constant 0 : index
    %c1 = arith.constant 1 : index
    %c0_8 = arith.constant 0 : index
    %c0_9 = arith.constant 0 : index
    %10 = vector.load %arg3[%c0_7, %c1, %c0_8, %c0_9] : memref<8x2x8x64xf32, #tpu.memory_space<vmem>>, vector<8x1x8x64xf32>
    %11 = vector.shape_cast %10 : vector<8x1x8x64xf32> to vector<8x8x64xf32>
    %12 = vector.shape_cast %9 : vector<8x8x64xf32> to vector<8x1x8x64xf32>
    tpu.vector_store %arg3[%c0_7, %c1, %c0_8, %c0_9], %12 {strides = array<i32>} : memref<8x2x8x64xf32, #tpu.memory_space<vmem>>, vector<8x1x8x64xf32>,
    return
  }
  func.func @transform_0(%arg0: i32) -> (i32, i32) {
    %c0_i32 = arith.constant 0 : i32
    %c0_i32_0 = arith.constant 0 : i32
    return %arg0, %c0_i32 : i32, i32
  }
  func.func @transform_1(%arg0: i32) -> (i32, i32) {
    %c0_i32 = arith.constant 0 : i32
    %c0_i32_0 = arith.constant 0 : i32
    %c0_i32_1 = arith.constant 0 : i32
    return %c0_i32, %c0_i32_0 : i32, i32
  }
  func.func @transform_2(%arg0: i32) -> (i32, i32, i32, i32) {
    %c0_i32 = arith.constant 0 : i32
    %c0_i32_0 = arith.constant 0 : i32
    %c0_i32_1 = arith.constant 0 : i32
    %c0_i32_2 = arith.constant 0 : i32
    return %arg0, %c0_i32, %c0_i32_0, %c0_i32_1 : i32, i32, i32, i32
  }
}

</mosaic_0001>

<bundles_post_ra>
// kernel: patch_expand_forward.1
= control target key start
LH: loop header
LB: loop body
LE: loop exit
PB: predicated region body
PF: predicated region fallthrough
CT: control target
= control target key end

     0   :  { %s505_s9 = smov 0   ;;  %s576_s0 = inlined_call_operand.vmem [shape: f32[128,32], index: 0, kind: input, shape index: {}]   ;;  %s577_s1 = inlined_call_operand.vmem [shape: f32[32,128], index: 1, kind: input, shape index: {}]   ;;  %s578_s2 = inlined_call_operand.vmem [shape: f32[16,2,8,64], index: 2, kind: output, shape index: {}]  }
   0x1 LB: > { %s399_s10 = sadd.s32 4294967295, %s487_s9   ;;  %p403_p0 = scmp.ge.s32.totalorder %s487_s9, 1  ;;  %s487_s9 = sphi %s505_s9, %s12_s9  }
   0x2   : > { %p113_p1 = scmp.lt.s32.totalorder %s487_s9, 3 }
   0x4   : > { %p114_p2 = pnand %p403_p0, %p113_p1 }
   0x5   : > { %v157_v0 = vld [vmem:[%s577_s1] sm:$0xff] (!%p114_p2)  ;;  %v158_v1 = vld [vmem:[%s577_s1 + $0x8] sm:$0xff] (!%p114_p2)  ;;  %v159_v2 = vld [vmem:[%s577_s1 + $0x10] sm:$0xff] (!%p114_p2)  ;;  %s404_s17 = sshll.u32 (!%p114_p2), %s399_s10, 3  ;;  %vm161_vm0 = vcmask (!%p114_p2), 261120   ;;  %vm291_vm1 = vcmask (!%p114_p2), 523264  }
   0x6   : > { %117 = sbr.rel (%p114_p2) target bundleno = 359 (0x167), region = 28  ;;  %v460_v3 = vpack.c.bf16 (!%p114_p2), %v158_v1, %v157_v0  ;;  %v160_v4 = vld [vmem:[%s577_s1 + $0x18] sm:$0xff] (!%p114_p2)  ;;  %p137_p3 = scmp.lt.s32.totalorder (!%p114_p2), %s404_s17, 15 }
   0x7   : > { %v464_v5 = vpack.c.bf16 (!%p114_p2), %v160_v4, %v159_v2  ;;  %s489_s28 = smov (!%p114_p2), 64  }
   0x8   : > { %461 = vmatprep.subr.bf16.mxu0 (!%p114_p2), %v460_v3  ;;  %468 = vmatprep.subr.bf16.mxu1 (!%p114_p2), %v460_v3 }
   0x9   : > { %463 = vmatpush3.bf16.msra.mxu0 (!%p114_p2), %v460_v3  ;;  %470 = vmatpush3.bf16.msra.mxu1 (!%p114_p2), %v460_v3 }
   0xa   : > { %465 = vmatprep.subr.bf16.mxu0 (!%p114_p2), %v464_v5  ;;  %469 = vmatprep.subr.bf16.mxu1 (!%p114_p2), %v464_v5 }
   0xd   : > { %s580_s17 = smov (!%p137_p3, %s404_s17), 15  ;;  %467 = vmatpush3.bf16.msra.mxu0 %v464_v5  ;;  %471 = vmatpush3.bf16.msra.mxu1 %v464_v5 }
   0xe   : > { %s405_s20 = sshll.u32 %s580_s17, 3  ;;  %s427_s24 = sshll.u32 %s580_s17, 4 }
   0xf   : > { %s140_s23 = scalar_lea.vmem %s576_s0, %s405_s20  ;;  %s539_s27 = scalar_lea.vmem %s578_s2, %s427_s24 }
  0x10   : > { %v149_v6 = vld [vmem:[%s140_s23] sm:$0xff]  ;;  %v150_v8 = vld [vmem:[%s140_s23 + $0x8] sm:$0xff]  ;;  %v151_v10 = vld [vmem:[%s140_s23 + $0x10] sm:$0xff] }
  0x11   : > { %v153_v7 = vld [vmem:[%s140_s23 + $0x20] sm:$0xff]  ;;  %v154_v9 = vld [vmem:[%s140_s23 + $0x28] sm:$0xff]  ;;  %448 = vmatprep.mubr.msk.f32.mxu0 %vm161_vm0, %v149_v6  ;;  %v155_v11 = vld [vmem:[%s140_s23 + $0x30] sm:$0xff] }
  0x12   : > { %454 = vmatprep.mubr.msk.f32.mxu1 %vm161_vm0, %v153_v7  ;;  %449 = vmatmul.mubr.msk.f32.vlgmr.msra.gmra.mrb[0].mxu0 %vm161_vm0, %v150_v8  ;;  %v152_v12 = vld [vmem:[%s140_s23 + $0x18] sm:$0xff] }
  0x13   : > { %455 = vmatmul.mubr.msk.f32.vlgmr.msra.gmra.mrb[0].mxu1 %vm161_vm0, %v154_v9  ;;  %451 = vmatprep.mubr.msk.f32.mxu0 %vm161_vm0, %v151_v10  ;;  %v156_v13 = vld [vmem:[%s140_s23 + $0x38] sm:$0xff] }
  0x14   : > { %457 = vmatprep.mubr.msk.f32.mxu1 %vm161_vm0, %v155_v11 }
  0x16   : > { %452 = vmatmul.mubr.msk.f32.gmra.mrb[2].mxu0 %vm161_vm0, %v152_v12 }
  0x17   : > { %458 = vmatmul.mubr.msk.f32.gmra.mrb[2].mxu1 %vm161_vm0, %v156_v13 }
  0xe5   : > { %v450_v14 = vpop.f32.mrb[0].mxu0 }
  0xe6   : > { %v456_v15 = vpop.f32.mrb[0].mxu1  ;;  %293 = vst.msk [vmem:[%s539_s27 + $0x10] sm:$0xff] %vm291_vm1, %v450_v14  ;;  %310 = vrot.lane.b32.xlu0 %v450_v14, %s489_s28  ;;  %v252_v17 = vpop.f32.mrb[1].mxu0 }
  0xe7   : > { %297 = vst.msk [vmem:[%s539_s27 + $0x50] sm:$0xff] %vm291_vm1, %v456_v15  ;;  %318 = vrot.lane.b32.xlu1 %v456_v15, %s489_s28  ;;  %v272_v16 = vpop.f32.mrb[1].mxu1  ;;  %292 = vst.msk [vmem:[%s539_s27] sm:$0xff] %vm291_vm1, %v252_v17 }
  0xe8   : > { %296 = vst.msk [vmem:[%s539_s27 + $0x40] sm:$0xff] %vm291_vm1, %v272_v16 }
  0xe9   : > { %v453_v18 = vpop.f32.mrb[2].mxu0 }
  0xea   : > { %v459_v19 = vpop.f32.mrb[2].mxu1  ;;  %295 = vst.msk [vmem:[%s539_s27 + $0x30] sm:$0xff] %vm291_vm1, %v453_v18  ;;  %308 = vrot.lane.b32.xlu0 %v252_v17, %s489_s28  ;;  %v262_v20 = vpop.f32.mrb[3].mxu0 }
  0xeb   : > { %314 = vrot.lane.b32.xlu1 %v453_v18, %s489_s28  ;;  %299 = vst.msk [vmem:[%s539_s27 + $0x70] sm:$0xff] %vm291_vm1, %v459_v19  ;;  %v282_v21 = vpop.f32.mrb[3].mxu1  ;;  %294 = vst.msk [vmem:[%s539_s27 + $0x20] sm:$0xff] %vm291_vm1, %v262_v20 }
  0xec   : > { %298 = vst.msk [vmem:[%s539_s27 + $0x60] sm:$0xff] %vm291_vm1, %v282_v21 }
  0xee   : > { %316 = vrot.lane.b32.xlu0 %v272_v16, %s489_s28 }
  0xef   : > { %312 = vrot.lane.b32.xlu1 %v262_v20, %s489_s28 }
  0xf2   : > { %320 = vrot.lane.b32.xlu0 %v282_v21, %s489_s28 }
  0xf3   : > { %322 = vrot.lane.b32.xlu1 %v459_v19, %s489_s28 }
 0x158   : > { %v311_v23 = vpop.permute.xlu0 %310 }
 0x159   : > { %v319_v22 = vpop.permute.xlu1 %318  ;;  %418 = vst.msk [vmem:[%s539_s27 + $0x18] sm:$0xff] %vm291_vm1, %v311_v23 }
 0x15a   : > { %422 = vst.msk [vmem:[%s539_s27 + $0x58] sm:$0xff] %vm291_vm1, %v319_v22 }
 0x15c   : > { %v309_v24 = vpop.permute.xlu0 %308 }
 0x15d   : > { %v315_v25 = vpop.permute.xlu1 %314  ;;  %417 = vst.msk [vmem:[%s539_s27 + $0x8] sm:$0xff] %vm291_vm1, %v309_v24 }
 0x15e   : > { %420 = vst.msk [vmem:[%s539_s27 + $0x38] sm:$0xff] %vm291_vm1, %v315_v25 }
 0x160   : > { %v317_v26 = vpop.permute.xlu0 %316 }
 0x161   : > { %v313_v27 = vpop.permute.xlu1 %312  ;;  %421 = vst.msk [vmem:[%s539_s27 + $0x48] sm:$0xff] %vm291_vm1, %v317_v26 }
 0x162   : > { %419 = vst.msk [vmem:[%s539_s27 + $0x28] sm:$0xff] %vm291_vm1, %v313_v27 }
 0x164   : > { %v321_v28 = vpop.permute.xlu0 %320 }
 0x165   : > { %v323_v29 = vpop.permute.xlu1 %322  ;;  %423 = vst.msk [vmem:[%s539_s27 + $0x68] sm:$0xff] %vm291_vm1, %v321_v28 }
 0x166   : > { %424 = vst.msk [vmem:[%s539_s27 + $0x78] sm:$0xff] %vm291_vm1, %v323_v29 }
 0x167 PF: > { %s12_s9 = sadd.s32 1, %s487_s9  }
 0x168   : > { %p9_p4 = scmp.ge.s32.totalorder %s12_s9, 4  }
 0x16a   :  { %11 = sbr.rel (!%p9_p4) target bundleno = 1 (0x1), region = 59 }

</bundles_post_ra>
